<compile_context>
chip_gen: v6e
topology: v6e:2x2x1
jax: 0.10.0
libtpu: 0.0.40
codegen_flags: <defaults>
</compile_context>

<pallas_src>
import functools

import jax
import jax.numpy as jnp
from jax.experimental import pallas as pl
from jax.experimental.pallas import tpu as pltpu


def _round_up(x, m):
    return (x + m - 1) // m * m


def _pick_bm(batch):
    # Prefer 256-512 row tiles (multiples of 128 keep v5e's 128-wide MXU happy),
    # with at least 2 grid steps so pipelining / the v7x 2-TC split engage.
    for cand in (512, 256, 128):
        if batch >= 2 * cand:
            return cand
    if batch > 128:
        return 128
    return _round_up(max(batch, 8), 8)


def res_layer_kernel(x_ref, wcat_ref, b1_ref, w2_ref, bfin_ref, o_ref, *, dout):
    # x_ref:   (bm, Dpi)        bf16
    # wcat:    (Dpi, 2*Dpo)     bf16   == [W1 | W0]
    # b1:      (1, Dpo)         f32
    # w2:      (Dpo, Dpo)       bf16
    # bfin:    (1, Dpo)         f32    == b2 + b0
    # o_ref:   (bm, Dpo)        out dtype
    x = x_ref[...]

    # One MXU pass for fc1 and fc0 (shared LHS), f32 accumulation.
    xcat = jnp.dot(x, wcat_ref[...], preferred_element_type=jnp.float32)

    h = jnp.maximum(xcat[:, :dout] + b1_ref[...], 0.0)        # fc1 + ReLU (f32)
    x_res = xcat[:, dout:]                                    # fc0 residual (f32)

    y = jnp.dot(h.astype(w2_ref.dtype), w2_ref[...],
                preferred_element_type=jnp.float32)           # fc2 (bf16 MXU, f32 acc)

    # Single epilogue store: fc2 + residual + folded (b2 + b0) bias.
    o_ref[...] = (y + x_res + bfin_ref[...]).astype(o_ref.dtype)


def res_layer(x, params, *, bm=None, compute_dtype=jnp.bfloat16):
    """x: (B, Din).  params: dict of w1,b1,w2,b2,w0,b0 with weights as [in, out]."""
    B, Din = x.shape
    Dout = params["w1"].shape[1]
    out_dtype = x.dtype

    if bm is None:
        bm = _pick_bm(B)

    # Pad feature dims to lane multiples (128) and batch to a bm multiple.
    Dpi = _round_up(Din, 128)
    Dpo = _round_up(Dout, 128)
    Bp = _round_up(B, bm)

    f32 = jnp.float32
    w1 = params["w1"].astype(f32)
    w0 = params["w0"].astype(f32)
    w2 = params["w2"].astype(f32)
    b1 = params["b1"].astype(f32)
    b2 = params["b2"].astype(f32)
    b0 = params["b0"].astype(f32)

    # Host-side fusion + zero padding.
    w1p = jnp.zeros((Dpi, Dpo), f32).at[:Din, :Dout].set(w1)
    w0p = jnp.zeros((Dpi, Dpo), f32).at[:Din, :Dout].set(w0)
    w2p = jnp.zeros((Dpo, Dpo), f32).at[:Dout, :Dout].set(w2)
    wcat = jnp.concatenate([w1p, w0p], axis=1).astype(compute_dtype)   # (Dpi, 2*Dpo)
    w2c = w2p.astype(compute_dtype)
    b1p = jnp.zeros((1, Dpo), f32).at[0, :Dout].set(b1)
    bfin = jnp.zeros((1, Dpo), f32).at[0, :Dout].set(b2 + b0)

    xp = jnp.zeros((Bp, Dpi), compute_dtype).at[:B, :Din].set(x.astype(compute_dtype))

    # VMEM budget: single-buffered weights (Buffered(1)) + double-buffered x/out
    # tiles + live f32 intermediates, with headroom.
    cbytes = jnp.dtype(compute_dtype).itemsize
    obytes = jnp.dtype(out_dtype).itemsize
    weight_bytes = (wcat.size + w2c.size) * cbytes + (b1p.size + bfin.size) * 4
    io_bytes = 2 * bm * Dpi * cbytes + 2 * bm * Dpo * obytes
    live_bytes = bm * (2 * Dpo) * 4 + 2 * bm * Dpo * 4     # xcat + h/y values (f32)
    vmem_limit = int(max(32 << 20,
                         min(2 * (weight_bytes + io_bytes + live_bytes) + (8 << 20),
                             112 << 20)))

    flops = 2 * Bp * (Dpi * (2 * Dpo) + Dpo * Dpo) + 4 * Bp * Dpo
    bytes_accessed = (xp.size * cbytes + (wcat.size + w2c.size) * cbytes
                      + (b1p.size + bfin.size) * 4 + Bp * Dpo * obytes)
    cost = pl.CostEstimate(flops=flops, transcendentals=0,
                           bytes_accessed=bytes_accessed)

    out_p = pl.pallas_call(
        functools.partial(res_layer_kernel, dout=Dpo),
        out_shape=jax.ShapeDtypeStruct((Bp, Dpo), out_dtype),
        grid_spec=pltpu.PrefetchScalarGridSpec(
            num_scalar_prefetch=0,
            grid=(Bp // bm,),
            in_specs=[
                # x tile: streamed per grid step (default double-buffering).
                pl.BlockSpec((bm, Dpi), lambda i: (i, 0)),
                # Resident weights / biases: constant block index -> no need to
                # double-buffer; halve their VMEM with Buffered(1).
                pl.BlockSpec((Dpi, 2 * Dpo), lambda i: (0, 0),
                             pipeline_mode=pl.Buffered(1)),
                pl.BlockSpec((1, Dpo), lambda i: (0, 0),
                             pipeline_mode=pl.Buffered(1)),
                pl.BlockSpec((Dpo, Dpo), lambda i: (0, 0),
                             pipeline_mode=pl.Buffered(1)),
                pl.BlockSpec((1, Dpo), lambda i: (0, 0),
                             pipeline_mode=pl.Buffered(1)),
            ],
            out_specs=pl.BlockSpec((bm, Dpo), lambda i: (i, 0)),
        ),
        compiler_params=pltpu.CompilerParams(
            dimension_semantics=("parallel",),
            vmem_limit_bytes=vmem_limit,
        ),
        cost_estimate=cost,
    )(xp, wcat, b1p, w2c, bfin)

    return out_p[:B, :Dout]


def init_params(key, dim_in, dim_out):
    """Deterministic synthetic parameters (PyTorch Linear init, stored as [in, out])."""
    ks = jax.random.split(key, 6)
    s_in = 1.0 / jnp.sqrt(dim_in)
    s_out = 1.0 / jnp.sqrt(dim_out)
    return {
        "w1": jax.random.uniform(ks[0], (dim_in, dim_out), jnp.float32, -s_in, s_in),
        "b1": jax.random.uniform(ks[1], (dim_out,), jnp.float32, -s_in, s_in),
        "w2": jax.random.uniform(ks[2], (dim_out, dim_out), jnp.float32, -s_out, s_out),
        "b2": jax.random.uniform(ks[3], (dim_out,), jnp.float32, -s_out, s_out),
        "w0": jax.random.uniform(ks[4], (dim_in, dim_out), jnp.float32, -s_in, s_in),
        "b0": jax.random.uniform(ks[5], (dim_out,), jnp.float32, -s_in, s_in),
    }


def res_layer_ref(x, params, compute_dtype=jnp.bfloat16):
    """Pure-JAX reference matching the PyTorch forward (bn/dropout = identity),
    using the same bf16 inputs + f32 accumulation as the kernel."""
    xc = x.astype(compute_dtype)
    w1 = params["w1"].astype(compute_dtype)
    w0 = params["w0"].astype(compute_dtype)
    w2 = params["w2"].astype(compute_dtype)
    x_res = jnp.dot(xc, w0, preferred_element_type=jnp.float32) + params["b0"]
    h = jnp.maximum(jnp.dot(xc, w1, preferred_element_type=jnp.float32) + params["b1"], 0.0)
    y = jnp.dot(h.astype(compute_dtype), w2, preferred_element_type=jnp.float32) + params["b2"]
    return (y + x_res).astype(x.dtype)


if __name__ == "__main__":
    B, DIM_IN, DIM_OUT = 256, 96, 128   # dim_in != dim_out -> fc0 residual path

    key = jax.random.PRNGKey(0)
    kx, kp = jax.random.split(key)
    x = jax.random.normal(kx, (B, DIM_IN), dtype=jnp.float32)
    params = init_params(kp, DIM_IN, DIM_OUT)

    out = jax.block_until_ready(res_layer(x, params))
    ref = res_layer_ref(x, params)

    assert out.shape == (B, DIM_OUT), out.shape
    max_err = float(jnp.max(jnp.abs(out - ref)))
    assert max_err < 1e-2, max_err

    print("KERNEL_OK")
</pallas_src>

<mosaic_0001>
module attributes {stable_mosaic.version = 11 : i64} {
  func.func @res_layer_kernel(%arg0: i32, %arg1: memref<128x128xbf16, #tpu.memory_space<vmem>>, %arg2: memref<128x256xbf16, #tpu.memory_space<vmem>>, %arg3: memref<1x128xf32, #tpu.memory_space<vmem>>, %arg4: memref<128x128xbf16, #tpu.memory_space<vmem>>, %arg5: memref<1x128xf32, #tpu.memory_space<vmem>>, %arg6: memref<128x128xf32, #tpu.memory_space<vmem>>) attributes {dimension_semantics = [#tpu.dimension_semantics<parallel>], iteration_bounds = array<i64: 2>, scalar_prefetch = 0 : i64, scratch_operands = 0 : i64, tpu.core_type = #tpu.core_type<tc>, window_params = [{transform_indices = @transform_0, window_bounds = array<i64: 128, 128>}, {pipeline_mode = #tpu.pipeline_mode<synchronous>, transform_indices = @transform_1, window_bounds = array<i64: 128, 256>}, {pipeline_mode = #tpu.pipeline_mode<synchronous>, transform_indices = @transform_2, window_bounds = array<i64: 1, 128>}, {pipeline_mode = #tpu.pipeline_mode<synchronous>, transform_indices = @transform_3, window_bounds = array<i64: 128, 128>}, {pipeline_mode = #tpu.pipeline_mode<synchronous>, transform_indices = @transform_4, window_bounds = array<i64: 1, 128>}, {transform_indices = @transform_5, window_bounds = array<i64: 128, 128>}]} {
    %c0 = arith.constant 0 : index
    %c0_0 = arith.constant 0 : index
    %0 = vector.load %arg1[%c0, %c0_0] : memref<128x128xbf16, #tpu.memory_space<vmem>>, vector<128x128xbf16>
    %c0_1 = arith.constant 0 : index
    %c0_2 = arith.constant 0 : index
    %1 = vector.load %arg2[%c0_1, %c0_2] : memref<128x256xbf16, #tpu.memory_space<vmem>>, vector<128x256xbf16>
    %cst = arith.constant dense<0.000000e+00> : vector<128x256xf32>
    %2 = tpu.matmul %0, %1, %cst {dimension_numbers = #tpu.dot_dimension_numbers<[1], [0], [0], [1], [0, 0, 1, 1], [], []>} : vector<128x128xbf16>, vector<128x256xbf16>, vector<128x256xf32> -> vector<128x256xf32>
    %3 = vector.extract_strided_slice %2 {offsets = [0, 0], sizes = [128, 128], strides = [1, 1]} : vector<128x256xf32> to vector<128x128xf32>
    %c0_3 = arith.constant 0 : index
    %c0_4 = arith.constant 0 : index
    %4 = vector.load %arg3[%c0_3, %c0_4] : memref<1x128xf32, #tpu.memory_space<vmem>>, vector<1x128xf32>
    %5 = vector.broadcast %4 : vector<1x128xf32> to vector<128x128xf32>
    %6 = arith.addf %3, %5 : vector<128x128xf32>
    %cst_5 = arith.constant 0.000000e+00 : f32
    %7 = vector.broadcast %cst_5 : f32 to vector<128x128xf32>
    %8 = arith.maximumf %6, %7 : vector<128x128xf32>
    %9 = vector.extract_strided_slice %2 {offsets = [0, 128], sizes = [128, 128], strides = [1, 1]} : vector<128x256xf32> to vector<128x128xf32>
    %10 = arith.truncf %8 : vector<128x128xf32> to vector<128x128xbf16>
    %c0_6 = arith.constant 0 : index
    %c0_7 = arith.constant 0 : index
    %11 = vector.load %arg4[%c0_6, %c0_7] : memref<128x128xbf16, #tpu.memory_space<vmem>>, vector<128x128xbf16>
    %cst_8 = arith.constant dense<0.000000e+00> : vector<128x128xf32>
    %12 = tpu.matmul %10, %11, %cst_8 {dimension_numbers = #tpu.dot_dimension_numbers<[1], [0], [0], [1], [0, 0, 1, 1], [], []>} : vector<128x128xbf16>, vector<128x128xbf16>, vector<128x128xf32> -> vector<128x128xf32>
    %13 = arith.addf %12, %9 : vector<128x128xf32>
    %c0_9 = arith.constant 0 : index
    %c0_10 = arith.constant 0 : index
    %14 = vector.load %arg5[%c0_9, %c0_10] : memref<1x128xf32, #tpu.memory_space<vmem>>, vector<1x128xf32>
    %15 = vector.broadcast %14 : vector<1x128xf32> to vector<128x128xf32>
    %16 = arith.addf %13, %15 : vector<128x128xf32>
    %c0_11 = arith.constant 0 : index
    %c0_12 = arith.constant 0 : index
    %17 = vector.load %arg6[%c0_11, %c0_12] : memref<128x128xf32, #tpu.memory_space<vmem>>, vector<128x128xf32>
    tpu.vector_store %arg6[%c0_11, %c0_12], %16 {strides = array<i32>} : memref<128x128xf32, #tpu.memory_space<vmem>>, vector<128x128xf32>,
    return
  }
  func.func @transform_0(%arg0: i32) -> (i32, i32) {
    %c0_i32 = arith.constant 0 : i32
    %c0_i32_0 = arith.constant 0 : i32
    return %arg0, %c0_i32 : i32, i32
  }
  func.func @transform_1(%arg0: i32) -> (i32, i32) {
    %c0_i32 = arith.constant 0 : i32
    %c0_i32_0 = arith.constant 0 : i32
    %c0_i32_1 = arith.constant 0 : i32
    return %c0_i32, %c0_i32_0 : i32, i32
  }
  func.func @transform_2(%arg0: i32) -> (i32, i32) {
    %c0_i32 = arith.constant 0 : i32
    %c0_i32_0 = arith.constant 0 : i32
    %c0_i32_1 = arith.constant 0 : i32
    return %c0_i32, %c0_i32_0 : i32, i32
  }
  func.func @transform_3(%arg0: i32) -> (i32, i32) {
    %c0_i32 = arith.constant 0 : i32
    %c0_i32_0 = arith.constant 0 : i32
    %c0_i32_1 = arith.constant 0 : i32
    return %c0_i32, %c0_i32_0 : i32, i32
  }
  func.func @transform_4(%arg0: i32) -> (i32, i32) {
    %c0_i32 = arith.constant 0 : i32
    %c0_i32_0 = arith.constant 0 : i32
    %c0_i32_1 = arith.constant 0 : i32
    return %c0_i32, %c0_i32_0 : i32, i32
  }
  func.func @transform_5(%arg0: i32) -> (i32, i32) {
    %c0_i32 = arith.constant 0 : i32
    %c0_i32_0 = arith.constant 0 : i32
    return %arg0, %c0_i32 : i32, i32
  }
}

</mosaic_0001>

<bundles_post_ra>
// kernel: tpu_custom_call.1
= control target key start
LH: loop header
LB: loop body
LE: loop exit
PB: predicated region body
PF: predicated region fallthrough
CT: control target
= control target key end

     0   :  { %10 = vsyncpa [#allocation3], 0  ;;  %s1624_s0 = inlined_call_operand.hbm [shape: bf16[256,128], index: 0, kind: input, shape index: {}]   ;;  %s1625_s1 = inlined_call_operand.hbm [shape: bf16[128,256], index: 1, kind: input, shape index: {}]   ;;  %s1626_s2 = inlined_call_operand.vmem [shape: f32[1,128], index: 2, kind: input, shape index: {}]   ;;  %s1627_s3 = inlined_call_operand.hbm [shape: bf16[128,128], index: 3, kind: input, shape index: {}]   ;;  %s1628_s4 = inlined_call_operand.vmem [shape: f32[1,128], index: 4, kind: input, shape index: {}]   ;;  %s1629_s5 = inlined_call_operand.hbm [shape: f32[256,128], index: 5, kind: output, shape index: {}]  }
   0x1   :  { %12 = vsyncpa [#allocation3 + $0x1], 0 }
   0x2   :  { %13 = vsyncpa [#allocation6], 0 }
   0x3   :  { %14 = vsyncpa [#allocation4], 0 }
   0x4   :  { %16 = vsyncpa [#allocation4 + $0x1], 0  ;;  %s1308_s18 = smov 0   ;;  %s1310_s19 = smov 0  }
   0x5   :  { %s1312_s20 = smov 0   ;;  %s1314_s21 = smov 0  }
   0x6 LB: > { %s1329_s22 = sadd.s32 4294967295, %s1265_s21   ;;  %s901_s23 = sadd.s32 4294967294, %s1265_s21   ;;  %s1265_s21 = sphi %s1314_s21, %s1653_s21   ;;  %s1261_s20 = sphi %s1312_s20, %s1652_s20   ;;  %s1257_s19 = sphi %s1310_s19, %s1651_s19   ;;  %s1253_s18 = sphi %s1308_s18, %s1650_s18  }
   0x7   : > { %p42_p0 = scmp.ne.s32.totalorder %s1257_s19, %s1253_s18  ;;  %p1630_p1 = scmp.eq.s32.totalorder %s1329_s22, 0 }
   0x8   : > { %p156_p3 = scmp.eq.s32.totalorder %s901_s23, 1  ;;  %p902_p5 = scmp.ge.s32.totalorder %s1265_s21, 1 }
   0x9   : > { %p1338_p4 = por %p1630_p1, %p42_p0  ;;  %p163_p7 = scmp.lt.s32.totalorder %s1265_s21, 3 }
   0xa   : > { %p1343_p6 = por %p156_p3, %p42_p0  ;;  %s1267_s27 = smov [#allocation5]  }
   0xb   : > { %s1635_s24 = scalar_select %p1338_p4, 1, 0 }
   0xc   : > { %s1636_s25 = scalar_select %p1343_p6, 1, 0 }
   0xd   : > { %p1348_p8 = pnand %p902_p5, %p163_p7  ;;  %s175_s28 = sshll.u32 %s1267_s27, 4  ;;  %s176_s28 = int_to_ptr.vmem [resolvable:$true] %s175_s28 }
   0xe   : > { %s1268_s30 = smov [#allocation7]   ;;  %s1128_s7 = scalar_lea.vmem %s176_s28, 2048 }
   0xf   : > { %s1637_s26 = scalar_select %p1348_p8, 1, 0 }
  0x10   : > { %p1015_p9 = pneg %p1348_p8  ;;  %s191_s6 = sshll.u32 %s1268_s30, 4  ;;  %s192_s6 = int_to_ptr.vmem [resolvable:$true] %s191_s6 }
  0x11   : > { %p1129_p13 = scmp.ne.s32.totalorder %s176_s28, %s1128_s7  ;;  %p1136_p5 = scmp.lt.s32.totalorder %s176_s28, %s176_s28 }
  0x12   : > { %p1357_p11 = pnand %p1015_p9, %p1630_p1  ;;  %p1137_p7 = scmp.lt.s32.totalorder %s1128_s7, %s1128_s7 }
  0x14   : > { %p1119_p12 = pneg %p1357_p11  ;;  %p1138_p10 = por %p1137_p7, %p1136_p5 }
  0x16   : > { %p1131_p0 = pnand %p1129_p13, %p1119_p12 }
  0x18   : > { %p1132_p3 = pneg %p1131_p0 }
  0x1a   : > { %p1139_p9 = pnand %p1138_p10, %p1132_p3 }
  0x1c   : > { %1142 = shalt.err (!%p1139_p9)
}
  0x1d   : > { %s1269_s8 = smov 128   ;;  %s1270_s9 = smov 8  }
  0x1e   : > { %1018 = dma.hbm_to_vmem [thread:$0]  (!%p1357_p11), %s1625_s1, 2048, %s176_s28, [#allocation6], %s1269_s8, %s1269_s8, %s1270_s9  }
  0x1f   : > { %s1154_s12 = scalar_lea.vmem %s192_s6, 1024  ;;  %p1162_p2 = scmp.lt.s32.totalorder %s192_s6, %s192_s6 }
  0x20   : > { %p1155_p1 = scmp.ne.s32.totalorder %s192_s6, %s1154_s12  ;;  %p1163_p6 = scmp.lt.s32.totalorder %s1154_s12, %s1154_s12 }
  0x22   : > { %p1157_p13 = pnand %p1155_p1, %p1119_p12  ;;  %p1164_p5 = por %p1163_p6, %p1162_p2 }
  0x24   : > { %p1158_p0 = pneg %p1157_p13 }
  0x26   : > { %p1165_p10 = pnand %p1164_p5, %p1158_p0 }
  0x28   : > { %1168 = shalt.err (!%p1165_p10)
}
  0x29   : > { %s1631_s13 = smov 64   ;;  %s1272_s14 = smov 4  }
  0x2a   : > { %1021 = dma.hbm_to_vmem [thread:$0]  (!%p1357_p11), %s1627_s3, 1024, %s192_s6, [#allocation6], %s1631_s13, %s1631_s13, %s1272_s14  }
  0x2b   : > { %s1383_s17 = sadd.s32 1, %s1265_s21   ;;  %s29_s27 = sadd.s32 1, %s1261_s20 }
  0x2c   : > { %s26_s23 = ssub.s32 %s1265_s21, %s1383_s17  ;;  %p36_p2 = scmp.ne.s32.totalorder %s1261_s20, %s1257_s19 }
  0x2d   : > { %p27_p1 = scmp.eq.s32.totalorder %s26_s23, 0  ;;  %p37_p6 = scmp.eq.s32.totalorder %s1265_s21, 0 }
  0x2e   : > { %p1639_p3 = scmp.eq.s32.totalorder %s1329_s22, 1  ;;  %p1032_p9 = scmp.lt.s32.totalorder %s1265_s21, 2 }
  0x2f   : > { %s1392_s28 = scalar_select %p27_p1, %s1261_s20, %s29_s27  }
  0x30   : > { %p38_p12 = por %p37_p6, %p36_p2  ;;  %p1396_p7 = por %p1639_p3, %p36_p2 }
  0x31   : > { %s208_s30 = sand.u32 1, %s1261_s20   ;;  %s953_s6 = sshll.u32 %s1265_s21, 10 }
  0x32   : > { %s1640_s29 = scalar_select %p1396_p7, 1, 0 }
  0x33   : > { %s906_s7 = sshll.u32 %s208_s30, 6  ;;  %s1406_s10 = scalar_lea.hbm %s1624_s0, %s953_s6 }
  0x34   : > { %s212_s11 = scalar_lea.vmem [#allocation2], %s906_s7  ;;  %p1410_p11 = pnand %p1032_p9, %p38_p12 }
  0x35   : > { %s219_s12 = sshll.u32 %s212_s11, 4  ;;  %s1414_s16 = scalar_lea.sflag [#allocation3], %s208_s30  ;;  %s1408_s12 = int_to_ptr.vmem [resolvable:$true] %s219_s12 }
  0x36   : > { %s1169_s23 = scalar_lea.hbm %s1406_s10, 1024  ;;  %p1171_p0 = pneg %p1410_p11 }
  0x37   : > { %p1170_p13 = scmp.ne.s32.totalorder %s1406_s10, %s1169_s23  ;;  %s1174_s7 = scalar_lea.hbm %s1624_s0, 2048 }
  0x38   : > { %p1175_p1 = scmp.lt.s32.totalorder %s1406_s10, %s1624_s0  ;;  %p1176_p2 = scmp.lt.s32.totalorder %s1174_s7, %s1169_s23 }
  0x39   : > { %p1172_p5 = pnand %p1171_p0, %p1170_p13 }
  0x3a   : > { %p1177_p6 = por %p1176_p2, %p1175_p1 }
  0x3b   : > { %p1173_p10 = pneg %p1172_p5 }
  0x3d   : > { %p1178_p12 = pnand %p1177_p6, %p1173_p10 }
  0x3f   : > { %1181 = shalt.err (!%p1178_p12)
}
  0x40   : > { %s1182_s30 = scalar_lea.vmem %s1408_s12, 1024  ;;  %s1273_s11 = smov [#allocation2]  }
  0x41   : > { %p1183_p3 = scmp.ne.s32.totalorder %s1408_s12, %s1182_s30  ;;  %s1187_s13 = sshll.u32 %s1273_s11, 4  ;;  %s1188_s13 = int_to_ptr.vmem [resolvable:$false] %s1187_s13 }
  0x42   : > { %s1189_s27 = scalar_lea.vmem %s1188_s13, 2048  ;;  %p1190_p5 = scmp.lt.s32.totalorder %s1408_s12, %s1188_s13 }
  0x43   : > { %p1185_p9 = pnand %p1183_p3, %p1171_p0  ;;  %p1191_p7 = scmp.lt.s32.totalorder %s1189_s27, %s1182_s30 }
  0x45   : > { %p1186_p13 = pneg %p1185_p9  ;;  %p1192_p4 = por %p1191_p7, %p1190_p5 }
  0x47   : > { %p1193_p8 = pnand %p1192_p4, %p1186_p13 }
  0x49   : > { %1196 = shalt.err (!%p1193_p8)
}
  0x4a   : > { %s1642_s23 = smov 64   ;;  %p1643_p0 = scmp.ne.s32.totalorder %s1637_s26, 0 }
  0x4b   : > { %1025 = dma.hbm_to_vmem [thread:$0]  (!%p1410_p11), %s1406_s10, 1024, %s1408_s12, %s1414_s16, %s1642_s23, %s1642_s23, %s1272_s14  }
  0x4c   : > { %231 = sbr.rel (%p1643_p0) target bundleno = 594 (0x252), region = 40  ;;  %s1441_s6 = sand.u32 (!%p1643_p0), 1, %s1257_s19  }
  0x4d   : > { %s910_s13 = sshll.u32 (!%p1643_p0), %s1441_s6, 6  ;;  %s234_s7 = scalar_lea.sflag (!%p1643_p0), [#allocation3], %s1441_s6 }
  0x4e   : > { %s1445_s8 = scalar_lea.vmem (!%p1643_p0), [#allocation2], %s910_s13  ;;  %p1644_p4 = scmp.ne.s32.totalorder (!%p1643_p0), %s1635_s24, 0 }
  0x51   : > { %1240 = dma.done.wait (%p1644_p4), %s234_s7, 1024  }
  0x52   : > { %1242 = vsyncadd (%p1644_p4), %s234_s7, 4294966272  ;;  %p1645_p8 = scmp.eq.s32.totalorder %s1329_s22, 0 }
  0x54   : > { %1244 = dma.done.wait (%p1645_p8), [#allocation6], 3072   ;;  %p1646_p7 = pmov %p1645_p8 }
  0x55   : > { %v1274_v0 = vmov 0   ;;  %v1077_v1 = vld [vmem:[#allocation5 + $0x74] ss:$8 sps:$4 sm:$0xff]   ;;  %v1079_v2 = vld [vmem:[#allocation5 + $0x70] ss:$8 sps:$4 sm:$0xff]   ;;  %v1111_v18 = vld [vmem:[#allocation7 + $0x28] sm:$0xff]  }
  0x56   : > { %1246 = vsyncadd (%p1646_p7), [#allocation6], 4294964224  ;;  %467 = vmatprep.mubr.bf16.mxu0 %v1274_v0  ;;  %435 = vmatprep.subr.bf16.mxu0 %v1077_v1  ;;  %v1080_v3 = vld [vmem:[#allocation5 + $0x64] ss:$8 sps:$4 sm:$0xff]   ;;  %v1082_v4 = vld [vmem:[#allocation5 + $0x60] ss:$8 sps:$4 sm:$0xff]  }
  0x57   : > { %436 = vmatpush1.bf16.msra.mxu0 %v1079_v2  ;;  %v1083_v5 = vld [vmem:[#allocation5 + $0x54] ss:$8 sps:$4 sm:$0xff]   ;;  %v1085_v6 = vld [vmem:[#allocation5 + $0x50] ss:$8 sps:$4 sm:$0xff]   ;;  %v1086_v7 = vld [vmem:[#allocation5 + $0x44] ss:$8 sps:$4 sm:$0xff]  }
  0x58   : > { %437 = vmatprep.subr.bf16.mxu0 %v1080_v3  ;;  %v1088_v8 = vld [vmem:[#allocation5 + $0x40] ss:$8 sps:$4 sm:$0xff]   ;;  %v1089_v9 = vld [vmem:[#allocation5 + $0x34] ss:$8 sps:$4 sm:$0xff]   ;;  %v1091_v10 = vld [vmem:[#allocation5 + $0x30] ss:$8 sps:$4 sm:$0xff]  }
  0x59   : > { %v1092_v11 = vld [vmem:[#allocation5 + $0x24] ss:$8 sps:$4 sm:$0xff]   ;;  %v1094_v12 = vld [vmem:[#allocation5 + $0x20] ss:$8 sps:$4 sm:$0xff]   ;;  %v1095_v13 = vld [vmem:[#allocation5 + $0x14] ss:$8 sps:$4 sm:$0xff]  }
  0x5a   : > { %v1109_v14 = vld [vmem:[#allocation7 + $0x38] sm:$0xff]   ;;  %v1110_v15 = vld [vmem:[#allocation7 + $0x30] sm:$0xff]   ;;  %v1098_v17 = vld [vmem:[#allocation5 + $0x4] ss:$8 sps:$4 sm:$0xff]   ;;  %s913_s14 = sshll.u32 %s1441_s6, 7  ;;  %s954_s16 = sshll.u32 %s1329_s22, 11 }
  0x5b   : > { %438 = vmatpush1.bf16.msra.mxu0 %v1082_v4  ;;  %v1097_v16 = vld [vmem:[#allocation5 + $0x10] ss:$8 sps:$4 sm:$0xff]   ;;  %971 = vmatprep.subr.bf16.mxu1 %v1109_v14  ;;  %v1100_v19 = vld [vmem:[#allocation5] ss:$8 sps:$4 sm:$0xff]   ;;  %s1529_s15 = scalar_lea.vmem [#allocation8], %s913_s14  ;;  %s1576_s27 = scalar_lea.hbm %s1629_s5, %s954_s16 }
  0x5c   : > { %439 = vmatprep.subr.bf16.mxu0 %v1083_v5  ;;  %972 = vmatpush3.bf16.msra.mxu1 %v1109_v14  ;;  %v1112_v20 = vld [vmem:[#allocation7 + $0x20] sm:$0xff]   ;;  %v1102_v22 = vld [vmem:[%s1445_s8 + $0x8] sm:$0xff]   ;;  %v1103_v23 = vld [vmem:[%s1445_s8 + $0x10] sm:$0xff]   ;;  %s809_s9 = sshll.u32 %s1529_s15, 4  ;;  %s796_s22 = scalar_lea.sflag [#allocation4], %s1441_s6  ;;  %s1578_s9 = int_to_ptr.vmem [resolvable:$true] %s809_s9 }
  0x5d   : > { %973 = vmatprep.subr.bf16.mxu1 %v1110_v15  ;;  %v1101_v21 = vld [vmem:[%s1445_s8] sm:$0xff]   ;;  %v1104_v24 = vld [vmem:[%s1445_s8 + $0x18] sm:$0xff]   ;;  %v1106_v26 = vld [vmem:[%s1445_s8 + $0x28] sm:$0xff]   ;;  %s1197_s23 = scalar_lea.vmem %s1578_s9, 2048  ;;  %p1647_p10 = scmp.ne.s32.totalorder %s1640_s29, 0 }
  0x5e   : > { %v1105_v25 = vld [vmem:[%s1445_s8 + $0x20] sm:$0xff]   ;;  %v1107_v27 = vld [vmem:[%s1445_s8 + $0x30] sm:$0xff]   ;;  %v1108_v28 = vld [vmem:[%s1445_s8 + $0x38] sm:$0xff]   ;;  %p1198_p11 = scmp.ne.s32.totalorder %s1578_s9, %s1197_s23  ;;  %s1275_s13 = smov [#allocation8]  }
  0x5f   : > { %440 = vmatpush1.bf16.msra.mxu0 %v1085_v6  ;;  %v1113_v29 = vld [vmem:[#allocation7 + $0x18] sm:$0xff]   ;;  %v1114_v30 = vld [vmem:[#allocation7 + $0x10] sm:$0xff]   ;;  %v1115_v31 = vld [vmem:[#allocation7 + $0x8] sm:$0xff]   ;;  %s1201_s7 = sshll.u32 %s1275_s13, 4  ;;  %s1202_s7 = int_to_ptr.vmem [resolvable:$false] %s1201_s7 }
  0x60   : > { %441 = vmatprep.subr.bf16.mxu0 %v1086_v7  ;;  %974 = vmatpush3.bf16.msra.mxu1 %v1110_v15  ;;  %v1116_v32 = vld [vmem:[#allocation7] sm:$0xff]   ;;  %p1199_p1 = pnand %p1198_p11, %p1647_p10  ;;  %s1203_s8 = scalar_lea.vmem %s1202_s7, 4096 }
  0x61   : > { %975 = vmatprep.subr.bf16.mxu1 %v1111_v18  ;;  %v1474_v34 = vld [vmem:[%s1626_s2] ss:$0 sm:$0xff]  ;;  %p1204_p6 = scmp.lt.s32.totalorder %s1578_s9, %s1202_s7  ;;  %p1205_p12 = scmp.lt.s32.totalorder %s1203_s8, %s1197_s23 }
  0x62   : > { %p1200_p2 = pneg %p1199_p1 }
  0x63   : > { %442 = vmatpush1.bf16.msra.mxu0 %v1088_v8  ;;  %p1206_p3 = por %p1205_p12, %p1204_p6 }
  0x64   : > { %443 = vmatprep.subr.bf16.mxu0 %v1089_v9  ;;  %976 = vmatpush3.bf16.msra.mxu1 %v1111_v18 }
  0x65   : > { %977 = vmatprep.subr.bf16.mxu1 %v1112_v20  ;;  %p1207_p9 = pnand %p1206_p3, %p1200_p2 }
  0x67   : > { %444 = vmatpush1.bf16.msra.mxu0 %v1091_v10 }
  0x68   : > { %445 = vmatprep.subr.bf16.mxu0 %v1092_v11  ;;  %978 = vmatpush3.bf16.msra.mxu1 %v1112_v20 }
  0x69   : > { %979 = vmatprep.subr.bf16.mxu1 %v1113_v29 }
  0x6b   : > { %446 = vmatpush1.bf16.msra.mxu0 %v1094_v12 }
  0x6c   : > { %447 = vmatprep.subr.bf16.mxu0 %v1095_v13  ;;  %980 = vmatpush3.bf16.msra.mxu1 %v1113_v29 }
  0x6d   : > { %981 = vmatprep.subr.bf16.mxu1 %v1114_v30 }
  0x6f   : > { %448 = vmatpush1.bf16.msra.mxu0 %v1097_v16 }
  0x70   : > { %449 = vmatprep.subr.bf16.mxu0 %v1098_v17  ;;  %982 = vmatpush3.bf16.msra.mxu1 %v1114_v30 }
  0x71   : > { %983 = vmatprep.subr.bf16.mxu1 %v1115_v31 }
  0x73   : > { %450 = vmatpush1.bf16.msra.mxu0 %v1100_v19 }
  0x74   : > { %984 = vmatpush3.bf16.msra.mxu1 %v1115_v31 }
  0x75   : > { %985 = vmatprep.subr.bf16.mxu1 %v1116_v32 }
  0x76   : > { %468 = vmatmul.mubr.bf16.vlgmr.msra.gmra.mxu0 %v1101_v21 }
  0x77   : > { %477 = vmatprep.mubr.bf16.mxu0 %v1274_v0 }
  0x78   : > { %986 = vmatpush3.bf16.msra.mxu1 %v1116_v32 }
  0x7e   : > { %478 = vmatmul.mubr.bf16.gmra.mxu0 %v1102_v22 }
  0x7f   : > { %487 = vmatprep.mubr.bf16.mxu0 %v1274_v0 }
  0x86   : > { %488 = vmatmul.mubr.bf16.gmra.mxu0 %v1103_v23 }
  0x87   : > { %497 = vmatprep.mubr.bf16.mxu0 %v1274_v0 }
  0x8e   : > { %498 = vmatmul.mubr.bf16.gmra.mxu0 %v1104_v24 }
  0x8f   : > { %507 = vmatprep.mubr.bf16.mxu0 %v1274_v0 }
  0x96   : > { %508 = vmatmul.mubr.bf16.gmra.mxu0 %v1105_v25 }
  0x97   : > { %517 = vmatprep.mubr.bf16.mxu0 %v1274_v0 }
  0x9e   : > { %518 = vmatmul.mubr.bf16.gmra.mxu0 %v1106_v26 }
  0x9f   : > { %527 = vmatprep.mubr.bf16.mxu0 %v1274_v0 }
  0xa6   : > { %528 = vmatmul.mubr.bf16.gmra.mxu0 %v1107_v27 }
  0xa7   : > { %537 = vmatprep.mubr.bf16.mxu0 %v1274_v0 }
  0xae   : > { %538 = vmatmul.mubr.bf16.gmra.mxu0 %v1108_v28 }
 0x136   : > { %v469_v33 = vpop.f32.mrf.mxu0 }
 0x137   : > { %v555_v36 = vadd.f32 %v1474_v34, %v469_v33 }
 0x138   : > { %v1476_v35 = vpop.f32.mrf.mxu0 }
 0x139   : > { %v571_v40 = vmax.f32 %v555_v36, 0.0 }
 0x13a   : > { %v473_v37 = vpop.f32.mrf.mxu0 }
 0x13b   : > { %v556_v38 = vadd.f32 %v1474_v34, %v473_v37 }
 0x13c   : > { %v1480_v39 = vpop.f32.mrf.mxu0 }
 0x13d   : > { %v572_v41 = vmax.f32 %v556_v38, 0.0 }
 0x13e   : > { %v479_v42 = vpop.f32.mrf.mxu0 }
 0x13f   : > { %v587_v43 = vpack.c.bf16 %v572_v41, %v571_v40  ;;  %v557_v45 = vadd.f32 %v1474_v34, %v479_v42 }
 0x140   : > { %v1482_v44 = vpop.f32.mrf.mxu0 }
 0x141   : > { %987 = vmatprep.mubr.bf16.mxu1 %v587_v43  ;;  %v573_v49 = vmax.f32 %v557_v45, 0.0 }
 0x142   : > { %v483_v46 = vpop.f32.mrf.mxu0 }
 0x143   : > { %v558_v47 = vadd.f32 %v1474_v34, %v483_v46  ;;  %v1524_v46 = vld [vmem:[%s1628_s4] ss:$0 sm:$0xff] }
 0x144   : > { %v1486_v48 = vpop.f32.mrf.mxu0 }
 0x145   : > { %v574_v50 = vmax.f32 %v558_v47, 0.0 }
 0x146   : > { %v489_v51 = vpop.f32.mrf.mxu0 }
 0x147   : > { %v588_v52 = vpack.c.bf16 %v574_v50, %v573_v49  ;;  %v559_v54 = vadd.f32 %v1474_v34, %v489_v51 }
 0x148   : > { %v1488_v53 = vpop.f32.mrf.mxu0 }
 0x149   : > { %988 = vmatmul.mubr.bf16.vlgmr.msra.gmra.mxu1 %v588_v52  ;;  %v575_v58 = vmax.f32 %v559_v54, 0.0 }
 0x14a   : > { %v493_v55 = vpop.f32.mrf.mxu0 }
 0x14b   : > { %v560_v56 = vadd.f32 %v1474_v34, %v493_v55 }
 0x14c   : > { %v1492_v57 = vpop.f32.mrf.mxu0 }
 0x14d   : > { %v576_v59 = vmax.f32 %v560_v56, 0.0 }
 0x14e   : > { %v499_v60 = vpop.f32.mrf.mxu0 }
 0x14f   : > { %v589_v61 = vpack.c.bf16 %v576_v59, %v575_v58  ;;  %v561_v63 = vadd.f32 %v1474_v34, %v499_v60 }
 0x150   : > { %v1494_v62 = vpop.f32.mrf.mxu0 }
 0x151   : > { %991 = vmatprep.mubr.bf16.mxu1 %v589_v61  ;;  %v577_v3 = vmax.f32 %v561_v63, 0.0 }
 0x152   : > { %v503_v0 = vpop.f32.mrf.mxu0 }
 0x153   : > { %v562_v1 = vadd.f32 %v1474_v34, %v503_v0 }
 0x154   : > { %v1498_v2 = vpop.f32.mrf.mxu0 }
 0x155   : > { %v578_v4 = vmax.f32 %v562_v1, 0.0 }
 0x156   : > { %v509_v5 = vpop.f32.mrf.mxu0 }
 0x157   : > { %v590_v6 = vpack.c.bf16 %v578_v4, %v577_v3  ;;  %v563_v8 = vadd.f32 %v1474_v34, %v509_v5 }
 0x158   : > { %v1500_v7 = vpop.f32.mrf.mxu0 }
 0x159   : > { %992 = vmatmul.mubr.bf16.gmra.mxu1 %v590_v6  ;;  %v579_v12 = vmax.f32 %v563_v8, 0.0 }
 0x15a   : > { %v513_v9 = vpop.f32.mrf.mxu0 }
 0x15b   : > { %v564_v10 = vadd.f32 %v1474_v34, %v513_v9 }
 0x15c   : > { %v1504_v11 = vpop.f32.mrf.mxu0 }
 0x15d   : > { %v580_v13 = vmax.f32 %v564_v10, 0.0 }
 0x15e   : > { %v519_v14 = vpop.f32.mrf.mxu0 }
 0x15f   : > { %v591_v15 = vpack.c.bf16 %v580_v13, %v579_v12  ;;  %v565_v17 = vadd.f32 %v1474_v34, %v519_v14 }
 0x160   : > { %v1506_v16 = vpop.f32.mrf.mxu0 }
 0x161   : > { %995 = vmatprep.mubr.bf16.mxu1 %v591_v15  ;;  %v581_v21 = vmax.f32 %v565_v17, 0.0 }
 0x162   : > { %v523_v18 = vpop.f32.mrf.mxu0 }
 0x163   : > { %v566_v19 = vadd.f32 %v1474_v34, %v523_v18 }
 0x164   : > { %v1510_v20 = vpop.f32.mrf.mxu0 }
 0x165   : > { %v582_v22 = vmax.f32 %v566_v19, 0.0 }
 0x166   : > { %v529_v23 = vpop.f32.mrf.mxu0 }
 0x167   : > { %v592_v24 = vpack.c.bf16 %v582_v22, %v581_v21  ;;  %v567_v26 = vadd.f32 %v1474_v34, %v529_v23 }
 0x168   : > { %v1512_v25 = vpop.f32.mrf.mxu0 }
 0x169   : > { %996 = vmatmul.mubr.bf16.gmra.mxu1 %v592_v24  ;;  %v583_v30 = vmax.f32 %v567_v26, 0.0 }
 0x16a   : > { %v533_v27 = vpop.f32.mrf.mxu0 }
 0x16b   : > { %v568_v28 = vadd.f32 %v1474_v34, %v533_v27 }
 0x16c   : > { %v1516_v29 = vpop.f32.mrf.mxu0 }
 0x16d   : > { %v584_v31 = vmax.f32 %v568_v28, 0.0 }
 0x16e   : > { %v539_v32 = vpop.f32.mrf.mxu0 }
 0x16f   : > { %v593_v33 = vpack.c.bf16 %v584_v31, %v583_v30  ;;  %v569_v37 = vadd.f32 %v1474_v34, %v539_v32 }
 0x170   : > { %v541_v36 = vpop.f32.mrf.mxu0 }
 0x171   : > { %999 = vmatprep.mubr.bf16.mxu1 %v593_v33  ;;  %v585_v41 = vmax.f32 %v569_v37, 0.0 }
 0x172   : > { %v543_v38 = vpop.f32.mrf.mxu0 }
 0x173   : > { %v570_v40 = vadd.f32 %v1474_v34, %v543_v38 }
 0x175   : > { %v586_v42 = vmax.f32 %v570_v40, 0.0 }
 0x177   : > { %v594_v43 = vpack.c.bf16 %v586_v42, %v585_v41 }
 0x179   : > { %1000 = vmatmul.mubr.bf16.gmra.mxu1 %v594_v43 }
 0x209   : > { %v989_v45 = vpop.f32.mrf.mxu1 }
 0x20a   : > { %v702_v47 = vadd.f32 %v989_v45, %v1482_v44 }
 0x20b   : > { %v693_v49 = vpop.f32.mrf.mxu1 }
 0x20c   : > { %v765_v50 = vadd.f32 %v1524_v46, %v702_v47  ;;  %v694_v51 = vadd.f32 %v693_v49, %v1476_v35 }
 0x20d   : > { %v990_v52 = vpop.f32.mrf.mxu1 }
 0x20e   : > { %781 = vst [vmem:[%s1529_s15 + $0x10] sm:$0xff] %v765_v50  ;;  %v763_v34 = vadd.f32 %v1524_v46, %v694_v51  ;;  %v705_v54 = vadd.f32 %v990_v52, %v1486_v48 }
 0x20f   : > { %v696_v55 = vpop.f32.mrf.mxu1 }
 0x210   : > { %779 = vst [vmem:[%s1529_s15] sm:$0xff] %v763_v34  ;;  %v766_v44 = vadd.f32 %v1524_v46, %v705_v54  ;;  %v697_v35 = vadd.f32 %v696_v55, %v1480_v39 }
 0x212   : > { %782 = vst [vmem:[%s1529_s15 + $0x18] sm:$0xff] %v766_v44  ;;  %v764_v56 = vadd.f32 %v1524_v46, %v697_v35 }
 0x214   : > { %780 = vst [vmem:[%s1529_s15 + $0x8] sm:$0xff] %v764_v56 }
 0x219   : > { %v993_v58 = vpop.f32.mrf.mxu1 }
 0x21a   : > { %v718_v59 = vadd.f32 %v993_v58, %v1494_v62 }
 0x21b   : > { %v709_v60 = vpop.f32.mrf.mxu1 }
 0x21c   : > { %v769_v61 = vadd.f32 %v1524_v46, %v718_v59  ;;  %v710_v48 = vadd.f32 %v709_v60, %v1488_v53 }
 0x21d   : > { %v994_v63 = vpop.f32.mrf.mxu1 }
 0x21e   : > { %785 = vst [vmem:[%s1529_s15 + $0x30] sm:$0xff] %v769_v61  ;;  %v767_v0 = vadd.f32 %v1524_v46, %v710_v48  ;;  %v721_v39 = vadd.f32 %v994_v63, %v1498_v2 }
 0x21f   : > { %v712_v1 = vpop.f32.mrf.mxu1 }
 0x220   : > { %783 = vst [vmem:[%s1529_s15 + $0x20] sm:$0xff] %v767_v0  ;;  %v770_v3 = vadd.f32 %v1524_v46, %v721_v39  ;;  %v713_v4 = vadd.f32 %v712_v1, %v1492_v57 }
 0x222   : > { %786 = vst [vmem:[%s1529_s15 + $0x38] sm:$0xff] %v770_v3  ;;  %v768_v62 = vadd.f32 %v1524_v46, %v713_v4 }
 0x224   : > { %784 = vst [vmem:[%s1529_s15 + $0x28] sm:$0xff] %v768_v62 }
 0x229   : > { %v997_v53 = vpop.f32.mrf.mxu1 }
 0x22a   : > { %v734_v5 = vadd.f32 %v997_v53, %v1506_v16 }
 0x22b   : > { %v725_v6 = vpop.f32.mrf.mxu1 }
 0x22c   : > { %v773_v8 = vadd.f32 %v1524_v46, %v734_v5  ;;  %v726_v2 = vadd.f32 %v725_v6, %v1500_v7 }
 0x22d   : > { %v998_v9 = vpop.f32.mrf.mxu1 }
 0x22e   : > { %789 = vst [vmem:[%s1529_s15 + $0x50] sm:$0xff] %v773_v8  ;;  %v771_v10 = vadd.f32 %v1524_v46, %v726_v2  ;;  %v737_v57 = vadd.f32 %v998_v9, %v1510_v20  ;;  %v545_v20 = vpop.f32.mrf.mxu0 }
 0x22f   : > { %v728_v12 = vpop.f32.mrf.mxu1 }
 0x230   : > { %787 = vst [vmem:[%s1529_s15 + $0x40] sm:$0xff] %v771_v10  ;;  %v774_v13 = vadd.f32 %v1524_v46, %v737_v57  ;;  %v729_v14 = vadd.f32 %v728_v12, %v1504_v11 }
 0x232   : > { %790 = vst [vmem:[%s1529_s15 + $0x58] sm:$0xff] %v774_v13  ;;  %v772_v15 = vadd.f32 %v1524_v46, %v729_v14 }
 0x234   : > { %788 = vst [vmem:[%s1529_s15 + $0x48] sm:$0xff] %v772_v15 }
 0x239   : > { %v1001_v7 = vpop.f32.mrf.mxu1 }
 0x23a   : > { %v750_v16 = vadd.f32 %v1001_v7, %v541_v36 }
 0x23b   : > { %v741_v17 = vpop.f32.mrf.mxu1 }
 0x23c   : > { %v777_v18 = vadd.f32 %v1524_v46, %v750_v16  ;;  %v742_v19 = vadd.f32 %v741_v17, %v1512_v25 }
 0x23d   : > { %v1002_v21 = vpop.f32.mrf.mxu1 }
 0x23e   : > { %793 = vst [vmem:[%s1529_s15 + $0x70] sm:$0xff] %v777_v18  ;;  %v775_v11 = vadd.f32 %v1524_v46, %v742_v19  ;;  %v753_v22 = vadd.f32 %v1002_v21, %v545_v20 }
 0x23f   : > { %v744_v23 = vpop.f32.mrf.mxu1 }
 0x240   : > { %791 = vst [vmem:[%s1529_s15 + $0x60] sm:$0xff] %v775_v11  ;;  %v778_v24 = vadd.f32 %v1524_v46, %v753_v22  ;;  %v745_v26 = vadd.f32 %v744_v23, %v1516_v29 }
 0x242   : > { %794 = vst [vmem:[%s1529_s15 + $0x78] sm:$0xff] %v778_v24  ;;  %v776_v25 = vadd.f32 %v1524_v46, %v745_v26 }
 0x244   : > { %792 = vst [vmem:[%s1529_s15 + $0x68] sm:$0xff] %v776_v25 }
 0x245   : > { %1210 = shalt.err (!%p1207_p9)
}
 0x246   : > { %s1211_s24 = scalar_lea.hbm %s1576_s27, 2048  ;;  %s1215_s10 = scalar_lea.hbm %s1629_s5, 4096 }
 0x247   : > { %p1212_p13 = scmp.ne.s32.totalorder %s1576_s27, %s1211_s24  ;;  %p1216_p4 = scmp.lt.s32.totalorder %s1576_s27, %s1629_s5 }
 0x248   : > { %p1217_p8 = scmp.lt.s32.totalorder %s1215_s10, %s1211_s24 }
 0x249   : > { %p1213_p5 = pnand %p1212_p13, %p1647_p10 }
 0x24a   : > { %p1218_p7 = por %p1217_p8, %p1216_p4 }
 0x24b   : > { %p1214_p0 = pneg %p1213_p5 }
 0x24d   : > { %p1219_p11 = pnand %p1218_p7, %p1214_p0 }
 0x24f   : > { %1222 = shalt.err (!%p1219_p11)
}
 0x250   : > { %s1276_s16 = smov 128   ;;  %s1277_s30 = smov 8  }
 0x251   : > { %1013 = dma.vmem_to_hbm [thread:$0]  (%p1647_p10), %s1578_s9, 2048, %s1576_s27, %s796_s22, %s1276_s16, %s1276_s16, %s1277_s30  }
 0x252 PF: > { %s824_s11 = sand.u32 1, %s1253_s18   ;;  %p1648_p1 = scmp.ne.s32.totalorder %s1636_s25, 0 }
 0x253   : > { %p1649_p2 = scmp.ge.s32.totalorder %s1265_s21, 2  ;;  %s825_s23 = scalar_lea.sflag [#allocation4], %s824_s11 }
 0x255   : > { %p1027_p6 = pnand %p1649_p2, %p1648_p1 }
 0x257   : > { %p1028_p12 = pneg %p1027_p6 }
 0x259   : > { %1248 = dma.done.wait (%p1028_p12), %s825_s23, 2048  }
 0x25a   : > { %1250 = vsyncadd (%p1028_p12), %s825_s23, 4294965248  ;;  %p19_p3 = scmp.ge.s32.totalorder %s1383_s17, 4   ;;  %s1650_s18 = smov %s1257_s19 }
 0x25b   : > { %s1651_s19 = smov %s1261_s20  ;;  %s1652_s20 = smov %s1392_s28 }
 0x25c   : > { %s1653_s21 = smov %s1383_s17  ;;  %21 = sbr.rel (!%p19_p3) target bundleno = 6 (0x6), region = 93 }
 0x261   :  { %830 = vsyncpa [#allocation3], 1 }
 0x262   :  { %832 = vsyncpa [#allocation3 + $0x1], 1 }
 0x263   :  { %833 = vsyncpa [#allocation6], 1 }
 0x264   :  { %834 = vsyncpa [#allocation4], 1 }
 0x265   :  { %836 = vsyncpa [#allocation4 + $0x1], 1 }

</bundles_post_ra>
